<compile_context>
chip_gen: v6e
topology: v6e:2x2x1
jax: 0.10.0
libtpu: 0.0.40
codegen_flags: <defaults>
</compile_context>

<pallas_src>
import jax
import jax.numpy as jnp
from jax.experimental import pallas as pl
from jax.experimental.pallas import tpu as pltpu

# Module-implied fixed sizes: Conv2d(2, 2, 3) on 2-channel input.
CIN, COUT = 2, 2
KH, KW = 3, 3
KSIZE = CIN * KH * KW  # 18


def _fused_conv_gemm_kernel(p_ref, w_ref, b_ref, o_ref):
    """One matmul + bias add per (TM, COUT) output row block.

    p_ref: (TM, KSIZE)   f32 VMEM  im2col patches (lane-dense rows).
    w_ref: (KSIZE, COUT) f32 VMEM  summed weights, row index = ci*KH*KW + kh*KW + kw.
    b_ref: (1, COUT)     f32 VMEM  summed bias.
    o_ref: (TM, COUT)    f32 VMEM  output rows (reshaped to NCHW in the wrapper).
    """
    o_ref[...] = (
        jnp.dot(p_ref[...], w_ref[...], preferred_element_type=jnp.float32)
        + b_ref[...]
    )


def _im2col(x, oh, ow):
    """NCHW -> (N*OH*OW, CIN*KH*KW) patches, column order (ci, kh, kw)."""
    n = x.shape[0]
    cols = []
    for ci in range(CIN):
        for kh in range(KH):
            for kw in range(KW):
                cols.append(x[:, ci, kh:kh + oh, kw:kw + ow].reshape(n, oh * ow))
    p = jnp.stack(cols, axis=-1)          # (N, OH*OW, KSIZE)
    return p.reshape(n * oh * ow, KSIZE)  # row index = n*OH*OW + oh*OW + ow


@jax.jit
def model_forward(x, w1, b1, w2, b2):
    """s1 + t1 where s1 = conv2d(x, w1)+b1, t1 = conv2d(x, w2)+b2 (valid, stride 1).

    Conv is linear, so the two convs collapse to one with summed weights/bias.
    im2col + output reshape stay in XLA; the Pallas kernel is one GEMM + add.
    """
    n, cin, h, w = x.shape
    assert cin == CIN, cin
    oh, ow = h - KH + 1, w - KW + 1
    m = n * oh * ow

    p = _im2col(x, oh, ow)                     # (M, 18)
    w_sum = (w1 + w2).reshape(COUT, KSIZE).T   # (18, COUT), matches im2col column order
    b_sum = (b1 + b2).reshape(1, COUT)         # (1, COUT)

    # Row-block tiling over im2col rows; "parallel" grid axis -> both TCs on v7x
    # when batched, degenerates to a single grid step at the tiny module shape.
    tm = 256 if m >= 256 else ((m + 7) // 8) * 8
    m_pad = pl.cdiv(m, tm) * tm
    if m_pad != m:
        p = jnp.pad(p, ((0, m_pad - m), (0, 0)))

    out2d = pl.pallas_call(
        _fused_conv_gemm_kernel,
        out_shape=jax.ShapeDtypeStruct((m_pad, COUT), jnp.float32),
        grid=(m_pad // tm,),
        in_specs=[
            pl.BlockSpec((tm, KSIZE), lambda i: (i, 0)),     # patches row block
            pl.BlockSpec((KSIZE, COUT), lambda i: (0, 0)),   # summed weights
            pl.BlockSpec((1, COUT), lambda i: (0, 0)),       # summed bias
        ],
        out_specs=pl.BlockSpec((tm, COUT), lambda i: (i, 0)),
        compiler_params=pltpu.CompilerParams(dimension_semantics=("parallel",)),
    )(p, w_sum, b_sum)

    # (M, COUT) -> (N, COUT, OH, OW): pure layout plumbing, done by XLA.
    return out2d[:m].reshape(n, oh, ow, COUT).transpose(0, 3, 1, 2)


def _reference(x, w1, b1, w2, b2):
    def conv(xx, ww, bb):
        y = jax.lax.conv_general_dilated(
            xx, ww, window_strides=(1, 1), padding="VALID",
            dimension_numbers=("NCHW", "OIHW", "NCHW"))
        return y + bb[None, :, None, None]
    return conv(x, w1, b1) + conv(x, w2, b2)


if __name__ == "__main__":
    key = jax.random.PRNGKey(0)
    kx, kw1, kb1, kw2, kb2, kxb = jax.random.split(key, 6)

    # Parameters with shapes from nn.Conv2d(2, 2, 3).
    w1 = jax.random.normal(kw1, (COUT, CIN, KH, KW), dtype=jnp.float32)
    b1 = jax.random.normal(kb1, (COUT,), dtype=jnp.float32)
    w2 = jax.random.normal(kw2, (COUT, CIN, KH, KW), dtype=jnp.float32)
    b2 = jax.random.normal(kb2, (COUT,), dtype=jnp.float32)

    # Module-implied input: x1 = torch.randn(1, 2, 4, 4).
    x = jax.random.normal(kx, (1, CIN, 4, 4), dtype=jnp.float32)
    out = jax.block_until_ready(model_forward(x, w1, b1, w2, b2))
    ref = jax.block_until_ready(_reference(x, w1, b1, w2, b2))
    assert out.shape == ref.shape == (1, COUT, 2, 2), out.shape
    assert jnp.allclose(out, ref, rtol=1e-5, atol=1e-5)

    # Batched call: amortizes launch/DMA fixed cost and exercises the parallel grid.
    xb = jax.random.normal(kxb, (128, CIN, 4, 4), dtype=jnp.float32)
    outb = jax.block_until_ready(model_forward(xb, w1, b1, w2, b2))
    refb = jax.block_until_ready(_reference(xb, w1, b1, w2, b2))
    assert outb.shape == refb.shape == (128, COUT, 2, 2), outb.shape
    assert jnp.allclose(outb, refb, rtol=1e-4, atol=1e-4)

    print("KERNEL_OK")
</pallas_src>

<mosaic_0001>
module attributes {stable_mosaic.version = 11 : i64} {
  func.func @_fused_conv_gemm_kernel(%arg0: i32, %arg1: memref<8x18xf32, #tpu.memory_space<vmem>>, %arg2: memref<18x2xf32, #tpu.memory_space<vmem>>, %arg3: memref<1x2xf32, #tpu.memory_space<vmem>>, %arg4: memref<8x2xf32, #tpu.memory_space<vmem>>) attributes {dimension_semantics = [#tpu.dimension_semantics<parallel>], iteration_bounds = array<i64: 1>, scalar_prefetch = 0 : i64, scratch_operands = 0 : i64, tpu.core_type = #tpu.core_type<tc>, window_params = [{transform_indices = @transform_0, window_bounds = array<i64: 8, 18>}, {pipeline_mode = #tpu.pipeline_mode<synchronous>, transform_indices = @transform_1, window_bounds = array<i64: 18, 2>}, {pipeline_mode = #tpu.pipeline_mode<synchronous>, transform_indices = @transform_2, window_bounds = array<i64: 1, 2>}, {transform_indices = @transform_3, window_bounds = array<i64: 8, 2>}]} {
    %c0 = arith.constant 0 : index
    %c0_0 = arith.constant 0 : index
    %0 = vector.load %arg1[%c0, %c0_0] : memref<8x18xf32, #tpu.memory_space<vmem>>, vector<8x18xf32>
    %c0_1 = arith.constant 0 : index
    %c0_2 = arith.constant 0 : index
    %1 = vector.load %arg2[%c0_1, %c0_2] : memref<18x2xf32, #tpu.memory_space<vmem>>, vector<18x2xf32>
    %cst = arith.constant dense<0.000000e+00> : vector<8x2xf32>
    %2 = tpu.matmul %0, %1, %cst {dimension_numbers = #tpu.dot_dimension_numbers<[1], [0], [0], [1], [0, 0, 1, 1], [], []>} : vector<8x18xf32>, vector<18x2xf32>, vector<8x2xf32> -> vector<8x2xf32>
    %c0_3 = arith.constant 0 : index
    %c0_4 = arith.constant 0 : index
    %3 = vector.load %arg3[%c0_3, %c0_4] : memref<1x2xf32, #tpu.memory_space<vmem>>, vector<1x2xf32>
    %4 = vector.broadcast %3 : vector<1x2xf32> to vector<8x2xf32>
    %5 = arith.addf %2, %4 : vector<8x2xf32>
    %c0_5 = arith.constant 0 : index
    %c0_6 = arith.constant 0 : index
    %6 = vector.load %arg4[%c0_5, %c0_6] : memref<8x2xf32, #tpu.memory_space<vmem>>, vector<8x2xf32>
    tpu.vector_store %arg4[%c0_5, %c0_6], %5 {strides = array<i32>} : memref<8x2xf32, #tpu.memory_space<vmem>>, vector<8x2xf32>,
    return
  }
  func.func @transform_0(%arg0: i32) -> (i32, i32) {
    %c0_i32 = arith.constant 0 : i32
    %c0_i32_0 = arith.constant 0 : i32
    return %arg0, %c0_i32 : i32, i32
  }
  func.func @transform_1(%arg0: i32) -> (i32, i32) {
    %c0_i32 = arith.constant 0 : i32
    %c0_i32_0 = arith.constant 0 : i32
    %c0_i32_1 = arith.constant 0 : i32
    return %c0_i32, %c0_i32_0 : i32, i32
  }
  func.func @transform_2(%arg0: i32) -> (i32, i32) {
    %c0_i32 = arith.constant 0 : i32
    %c0_i32_0 = arith.constant 0 : i32
    %c0_i32_1 = arith.constant 0 : i32
    return %c0_i32, %c0_i32_0 : i32, i32
  }
  func.func @transform_3(%arg0: i32) -> (i32, i32) {
    %c0_i32 = arith.constant 0 : i32
    %c0_i32_0 = arith.constant 0 : i32
    return %arg0, %c0_i32 : i32, i32
  }
}

</mosaic_0001>

<bundles_post_ra>
// kernel: squeeze.0
= control target key start
LH: loop header
LB: loop body
LE: loop exit
PB: predicated region body
PF: predicated region fallthrough
CT: control target
= control target key end

     0   :  { %vm8_vm0 = vcmask 7168   ;;  %s42_s0 = inlined_call_operand.vmem [shape: f32[1,1,2,2], index: 0, kind: input, shape index: {}]   ;;  %s43_s1 = inlined_call_operand.vmem [shape: f32[1,4,1], index: 1, kind: output, shape index: {}]  }
   0x1   :  { %v5_v0 = vld [vmem:[%s42_s0] sm:$0x3]  ;;  %s25_s0 = smov 127  }
   0x2   :  { %6 = vst [vmem:[#allocation1] sm:$0x3] %v5_v0 }
   0x9   :  { %v10_v1 = vld [vmem:[#allocation1] sm:$0x3]  }
   0xa   :  { %v7_v2 = vld [vmem:[#allocation1] sm:$0x3]   ;;  %11 = vrot.lane.b32.xlu0 %v10_v1, %s25_s0 }
   0xb   :  { %9 = vst.msk [vmem:[#allocation0] ss:$2 sm:$0x3] %vm8_vm0, %v7_v2  }
  0x7c   :  { %v12_v3 = vpop.permute.xlu0 %11  }
  0x7d   :  { %15 = vst.msk [vmem:[#allocation0 + $0x1] ss:$2 sm:$0x3] %vm8_vm0, %v12_v3  }
  0x84   :  { %v20_v4 = vld [vmem:[#allocation0] sm:$0xf] }
  0x85   :  { %23 = vst [vmem:[%s43_s1] sm:$0xf] %v20_v4 }

// kernel: model_forward.1
= control target key start
LH: loop header
LB: loop body
LE: loop exit
PB: predicated region body
PF: predicated region fallthrough
CT: control target
= control target key end

     0   :  { %vm29_vm0 = vcmask 1041408   ;;  %v127_v0 = vmov 0.0   ;;  %vm128_vm1 = vmmov 0   ;;  %vm25_vm2 = vcmask 146432   ;;  %s167_s1 = inlined_call_operand.vmem [shape: f32[18,2], index: 1, kind: input, shape index: {}]   ;;  %s168_s0 = inlined_call_operand.vmem [shape: f32[8,18], index: 0, kind: input, shape index: {}]   ;;  %s169_s2 = inlined_call_operand.vmem [shape: f32[1,2], index: 2, kind: input, shape index: {}]   ;;  %s170_s3 = inlined_call_operand.vmem [shape: f32[8,2], index: 3, kind: output, shape index: {}]  }
   0x1   :  { %116 = vmatprep.subr.mxu0 %v127_v0  ;;  %v17_v1 = vld [vmem:[%s167_s1 + $0x10] sm:$0x3]  ;;  %v16_v2 = vld [vmem:[%s167_s1 + $0x8] sm:$0xff]  ;;  %122 = vmatprep.mubr.msk.f32.mxu0 %vm128_vm1, %v127_v0  ;;  %v15_v3 = vld [vmem:[%s167_s1] sm:$0xff]  ;;  %vm103_vm3 = vcmask 15360  }
   0x2   :  { %117 = vmatpush3.msk.msra.mxu0 %vm29_vm0, %v17_v1  ;;  %v14_v4 = vld [vmem:[%s168_s0] sm:$0xff] }
   0x3   :  { %118 = vmatprep.subr.mxu0 %v127_v0  ;;  %v109_v5 = vld [vmem:[%s169_s2] ss:$0 sm:$0xff] }
   0x4   :  { %119 = vmatpush3.msra.mxu0 %v16_v2 }
   0x5   :  { %120 = vmatprep.subr.mxu0 %v127_v0 }
   0x6   :  { %121 = vmatpush3.msra.mxu0 %v15_v3 }
   0x7   :  { %123 = vmatmul.mubr.msk.f32.vlgmr.msra.gmra.mxu0 %vm25_vm2, %v14_v4 }
  0xc7   :  { %v99_v6 = vpop.f32.mrf.mxu0 }
  0xc8   :  { %v100_v7 = vadd.f32 %v109_v5, %v99_v6 }
  0xc9   :  { %v124_v8 = vpop.f32.mrf.mxu0 }
  0xca   :  { %104 = vst.msk [vmem:[%s170_s3] sm:$0xff] %vm103_vm3, %v100_v7 }

</bundles_post_ra>
